<compile_context>
chip_gen: v7x
topology: tpu7x:2x2x1
jax: 0.10.0
libtpu: 0.0.40
codegen_flags: <defaults>
</compile_context>

<pallas_src>
import jax
import jax.numpy as jnp
from jax.experimental import pallas as pl
from jax.experimental.pallas import tpu as pltpu

TASK = "ForagingBlocks-v0"
# Small shapes consistent with the module (seq_len shrunk from 300 -> 8).
TRAINING_KWARGS = {"dt": 100, "lr": 0.01, "seq_len": 8, "TASK": TASK}

_O_PAD = 128  # lane-dense width for the linear-head output slab


def _make_net_kernel(T, B):
    """Build the single-invocation ReLU-RNN + linear kernel for static (T, B)."""

    def _net_kernel(xa_ref, wih_ref, whh_ref, wlin_ref, blin_ref, h0_ref,
                    y_ref, out_ref):
        # xa_ref  : (T*B, I+1)  inputs with trailing ones column (RNN bias folded)
        # wih_ref : (I+1, H)    [W_ih ; b_ih + b_hh], pre-transposed
        # whh_ref : (H, H)      hidden->hidden weight (transposed)
        # wlin_ref: (H, O_PAD)  linear weight, zero-padded to 128 lanes
        # blin_ref: (1, O_PAD)  linear bias, zero-padded
        # h0_ref  : (B, H)      initial hidden state
        # y_ref   : (T*B, O_PAD) lane-dense linear output slab
        # out_ref : (T*B, H)    hidden-state output slab

        # (1) Hoisted non-recurrent input projection (+ folded bias) for ALL
        #     timesteps in one MXU call; `pre` stays in vregs (8 KiB here).
        pre = jnp.dot(xa_ref[...], wih_ref[...],
                      preferred_element_type=jnp.float32)

        w_hh = whh_ref[...]  # single load, kept live across the recurrence
        # TODO(synk): if the bundle dump shows Mosaic re-staging this 32x32 RHS
        # every step, drive the MXU explicitly (pltpu.matmul_push_rhs /
        # matmul_acc_lhs / matmul_pop); on v7x the MRB additionally lets the
        # `pre + h @ W_hh` add accumulate in-place in the result buffer.

        # (2) Serial recurrence, fully unrolled (T is small and static).
        #     Per step only h @ W_hh + vreg-resident pre + ReLU sit on the
        #     carry path; the h_new store to out_ref is off the chain.
        h = h0_ref[...]
        for t in range(T):
            rows = slice(t * B, (t + 1) * B)
            h = jnp.maximum(
                pre[rows, :]
                + jnp.dot(h, w_hh, preferred_element_type=jnp.float32),
                0.0)  # f32 ReLU (v5e-safe, no bf16 VPU path)
            out_ref[rows, :] = h
        # TODO(synk): at the real seq_len=300, switch to
        # lax.fori_loop(..., unroll=8) with `pre` staged in a VMEM scratch
        # (keeps the single pallas_call; avoids a 300x instruction blowup).

        # (3) Output projection once over all hidden states; one lane-dense
        #     unmasked store of the (T*B, 128) slab.
        y_ref[...] = (
            jnp.dot(out_ref[...], wlin_ref[...],
                    preferred_element_type=jnp.float32)
            + blin_ref[...])

    return _net_kernel


def net_forward(x, params, hidden=None):
    """Pallas equivalent of Net.forward. Returns (y, out)."""
    T, B, I = x.shape
    H = params["w_hh_t"].shape[0]
    O = params["w_lin_t"].shape[1]

    if hidden is None:
        # Mirrors: torch.zeros(1, seq_len, hidden_size)
        hidden = jnp.zeros((1, TRAINING_KWARGS["seq_len"], H), jnp.float32)
    assert hidden.shape == (1, B, H), "hidden batch dim must match x batch dim"

    # Fold the RNN bias into the hoisted projection via a ones column.
    x2d = x.reshape(T * B, I)
    xa = jnp.concatenate([x2d, jnp.ones((T * B, 1), jnp.float32)], axis=1)
    b_rnn = (params["b_ih"] + params["b_hh"]).reshape(1, H)
    wih_aug = jnp.concatenate([params["w_ih_t"], b_rnn], axis=0)   # (I+1, H)

    # Lane-dense linear head: zero-pad to 128 output lanes; slice in wrapper.
    wlin_pad = jnp.zeros((H, _O_PAD), jnp.float32).at[:, :O].set(params["w_lin_t"])
    blin_pad = jnp.zeros((1, _O_PAD), jnp.float32).at[0, :O].set(params["b_lin"])

    h0 = hidden[0]  # (B, H)

    vmem = pl.BlockSpec(memory_space=pltpu.MemorySpace.VMEM)

    y_pad, out2d = pl.pallas_call(
        _make_net_kernel(T, B),
        out_shape=(
            jax.ShapeDtypeStruct((T * B, _O_PAD), jnp.float32),
            jax.ShapeDtypeStruct((T * B, H), jnp.float32),
        ),
        in_specs=[vmem] * 6,
        out_specs=(vmem, vmem),
    )(xa, wih_aug, params["w_hh_t"], wlin_pad, blin_pad, h0)

    y = y_pad[:, :O].reshape(T, B, O)
    return y, out2d.reshape(T, B, H)


def init_params(key, input_size, hidden_size, output_size):
    """Deterministic init matching PyTorch shapes (uniform +/- 1/sqrt(H))."""
    k = 1.0 / jnp.sqrt(jnp.float32(hidden_size))
    keys = jax.random.split(key, 6)
    u = lambda kk, shape: jax.random.uniform(kk, shape, jnp.float32, -k, k)
    # PyTorch stores W_ih (H, I), W_hh (H, H), W_lin (O, H); we pre-transpose.
    w_ih = u(keys[0], (hidden_size, input_size))
    w_hh = u(keys[1], (hidden_size, hidden_size))
    b_ih = u(keys[2], (hidden_size,))
    b_hh = u(keys[3], (hidden_size,))
    w_lin = u(keys[4], (output_size, hidden_size))
    b_lin = u(keys[5], (output_size,))
    return {
        "w_ih_t": w_ih.T, "w_hh_t": w_hh.T,
        "b_ih": b_ih, "b_hh": b_hh,
        "w_lin_t": w_lin.T, "b_lin": b_lin,
    }


def net_forward_ref(x, params, hidden=None):
    """Pure-JAX reference for correctness checking."""
    T, B, I = x.shape
    H = params["w_hh_t"].shape[0]
    if hidden is None:
        hidden = jnp.zeros((1, TRAINING_KWARGS["seq_len"], H), jnp.float32)
    h = hidden[0]
    b = params["b_ih"] + params["b_hh"]

    def step(h, x_t):
        h_new = jnp.maximum(x_t @ params["w_ih_t"] + h @ params["w_hh_t"] + b, 0.0)
        return h_new, h_new

    _, outs = jax.lax.scan(step, h, x)
    y = outs @ params["w_lin_t"] + params["b_lin"]
    return y, outs


if __name__ == "__main__":
    # Small shapes implied by the module: x is (T, B, input_size) with
    # B == TRAINING_KWARGS['seq_len'] (the module builds hidden that way).
    input_size, hidden_size, output_size = 4, 32, 3
    T = 8
    B = TRAINING_KWARGS["seq_len"]  # 8

    key = jax.random.PRNGKey(0)
    k_param, k_x = jax.random.split(key)
    params = init_params(k_param, input_size, hidden_size, output_size)
    x = jax.random.normal(k_x, (T, B, input_size), jnp.float32)

    y, out = net_forward(x, params)
    jax.block_until_ready((y, out))

    y_ref, out_ref = net_forward_ref(x, params)
    assert jnp.allclose(y, y_ref, atol=1e-5), "linear output mismatch"
    assert jnp.allclose(out, out_ref, atol=1e-5), "hidden states mismatch"

    print("KERNEL_OK")
</pallas_src>

<mosaic_0001>
module attributes {stable_mosaic.version = 11 : i64} {
  func.func @_net_kernel(%arg0: memref<64x5xf32, #tpu.memory_space<vmem>>, %arg1: memref<5x32xf32, #tpu.memory_space<vmem>>, %arg2: memref<32x32xf32, #tpu.memory_space<vmem>>, %arg3: memref<32x128xf32, #tpu.memory_space<vmem>>, %arg4: memref<1x128xf32, #tpu.memory_space<vmem>>, %arg5: memref<8x32xf32, #tpu.memory_space<vmem>>, %arg6: memref<64x128xf32, #tpu.memory_space<vmem>>, %arg7: memref<64x32xf32, #tpu.memory_space<vmem>>) attributes {dimension_semantics = [], scalar_prefetch = 0 : i64, scratch_operands = 0 : i64, tpu.core_type = #tpu.core_type<tc>} {
    %c0 = arith.constant 0 : index
    %c0_0 = arith.constant 0 : index
    %0 = vector.load %arg0[%c0, %c0_0] : memref<64x5xf32, #tpu.memory_space<vmem>>, vector<64x5xf32>
    %c0_1 = arith.constant 0 : index
    %c0_2 = arith.constant 0 : index
    %1 = vector.load %arg1[%c0_1, %c0_2] : memref<5x32xf32, #tpu.memory_space<vmem>>, vector<5x32xf32>
    %cst = arith.constant dense<0.000000e+00> : vector<64x32xf32>
    %2 = tpu.matmul %0, %1, %cst {dimension_numbers = #tpu.dot_dimension_numbers<[1], [0], [0], [1], [0, 0, 1, 1], [], []>} : vector<64x5xf32>, vector<5x32xf32>, vector<64x32xf32> -> vector<64x32xf32>
    %c0_3 = arith.constant 0 : index
    %c0_4 = arith.constant 0 : index
    %3 = vector.load %arg2[%c0_3, %c0_4] : memref<32x32xf32, #tpu.memory_space<vmem>>, vector<32x32xf32>
    %c0_5 = arith.constant 0 : index
    %c0_6 = arith.constant 0 : index
    %4 = vector.load %arg5[%c0_5, %c0_6] : memref<8x32xf32, #tpu.memory_space<vmem>>, vector<8x32xf32>
    %5 = vector.extract_strided_slice %2 {offsets = [0, 0], sizes = [8, 32], strides = [1, 1]} : vector<64x32xf32> to vector<8x32xf32>
    %cst_7 = arith.constant dense<0.000000e+00> : vector<8x32xf32>
    %6 = tpu.matmul %4, %3, %cst_7 {dimension_numbers = #tpu.dot_dimension_numbers<[1], [0], [0], [1], [0, 0, 1, 1], [], []>} : vector<8x32xf32>, vector<32x32xf32>, vector<8x32xf32> -> vector<8x32xf32>
    %7 = arith.addf %5, %6 : vector<8x32xf32>
    %cst_8 = arith.constant 0.000000e+00 : f32
    %8 = vector.broadcast %cst_8 : f32 to vector<8x32xf32>
    %9 = arith.maximumf %7, %8 : vector<8x32xf32>
    %c0_9 = arith.constant 0 : index
    %c0_10 = arith.constant 0 : index
    %10 = vector.load %arg7[%c0_9, %c0_10] : memref<64x32xf32, #tpu.memory_space<vmem>>, vector<8x32xf32>
    tpu.vector_store %arg7[%c0_9, %c0_10], %9 {strides = array<i32>} : memref<64x32xf32, #tpu.memory_space<vmem>>, vector<8x32xf32>,
    %11 = vector.extract_strided_slice %2 {offsets = [8, 0], sizes = [8, 32], strides = [1, 1]} : vector<64x32xf32> to vector<8x32xf32>
    %cst_11 = arith.constant dense<0.000000e+00> : vector<8x32xf32>
    %12 = tpu.matmul %9, %3, %cst_11 {dimension_numbers = #tpu.dot_dimension_numbers<[1], [0], [0], [1], [0, 0, 1, 1], [], []>} : vector<8x32xf32>, vector<32x32xf32>, vector<8x32xf32> -> vector<8x32xf32>
    %13 = arith.addf %11, %12 : vector<8x32xf32>
    %cst_12 = arith.constant 0.000000e+00 : f32
    %14 = vector.broadcast %cst_12 : f32 to vector<8x32xf32>
    %15 = arith.maximumf %13, %14 : vector<8x32xf32>
    %c8 = arith.constant 8 : index
    %c0_13 = arith.constant 0 : index
    %16 = vector.load %arg7[%c8, %c0_13] : memref<64x32xf32, #tpu.memory_space<vmem>>, vector<8x32xf32>
    tpu.vector_store %arg7[%c8, %c0_13], %15 {strides = array<i32>} : memref<64x32xf32, #tpu.memory_space<vmem>>, vector<8x32xf32>,
    %17 = vector.extract_strided_slice %2 {offsets = [16, 0], sizes = [8, 32], strides = [1, 1]} : vector<64x32xf32> to vector<8x32xf32>
    %cst_14 = arith.constant dense<0.000000e+00> : vector<8x32xf32>
    %18 = tpu.matmul %15, %3, %cst_14 {dimension_numbers = #tpu.dot_dimension_numbers<[1], [0], [0], [1], [0, 0, 1, 1], [], []>} : vector<8x32xf32>, vector<32x32xf32>, vector<8x32xf32> -> vector<8x32xf32>
    %19 = arith.addf %17, %18 : vector<8x32xf32>
    %cst_15 = arith.constant 0.000000e+00 : f32
    %20 = vector.broadcast %cst_15 : f32 to vector<8x32xf32>
    %21 = arith.maximumf %19, %20 : vector<8x32xf32>
    %c16 = arith.constant 16 : index
    %c0_16 = arith.constant 0 : index
    %22 = vector.load %arg7[%c16, %c0_16] : memref<64x32xf32, #tpu.memory_space<vmem>>, vector<8x32xf32>
    tpu.vector_store %arg7[%c16, %c0_16], %21 {strides = array<i32>} : memref<64x32xf32, #tpu.memory_space<vmem>>, vector<8x32xf32>,
    %23 = vector.extract_strided_slice %2 {offsets = [24, 0], sizes = [8, 32], strides = [1, 1]} : vector<64x32xf32> to vector<8x32xf32>
    %cst_17 = arith.constant dense<0.000000e+00> : vector<8x32xf32>
    %24 = tpu.matmul %21, %3, %cst_17 {dimension_numbers = #tpu.dot_dimension_numbers<[1], [0], [0], [1], [0, 0, 1, 1], [], []>} : vector<8x32xf32>, vector<32x32xf32>, vector<8x32xf32> -> vector<8x32xf32>
    %25 = arith.addf %23, %24 : vector<8x32xf32>
    %cst_18 = arith.constant 0.000000e+00 : f32
    %26 = vector.broadcast %cst_18 : f32 to vector<8x32xf32>
    %27 = arith.maximumf %25, %26 : vector<8x32xf32>
    %c24 = arith.constant 24 : index
    %c0_19 = arith.constant 0 : index
    %28 = vector.load %arg7[%c24, %c0_19] : memref<64x32xf32, #tpu.memory_space<vmem>>, vector<8x32xf32>
    tpu.vector_store %arg7[%c24, %c0_19], %27 {strides = array<i32>} : memref<64x32xf32, #tpu.memory_space<vmem>>, vector<8x32xf32>,
    %29 = vector.extract_strided_slice %2 {offsets = [32, 0], sizes = [8, 32], strides = [1, 1]} : vector<64x32xf32> to vector<8x32xf32>
    %cst_20 = arith.constant dense<0.000000e+00> : vector<8x32xf32>
    %30 = tpu.matmul %27, %3, %cst_20 {dimension_numbers = #tpu.dot_dimension_numbers<[1], [0], [0], [1], [0, 0, 1, 1], [], []>} : vector<8x32xf32>, vector<32x32xf32>, vector<8x32xf32> -> vector<8x32xf32>
    %31 = arith.addf %29, %30 : vector<8x32xf32>
    %cst_21 = arith.constant 0.000000e+00 : f32
    %32 = vector.broadcast %cst_21 : f32 to vector<8x32xf32>
    %33 = arith.maximumf %31, %32 : vector<8x32xf32>
    %c32 = arith.constant 32 : index
    %c0_22 = arith.constant 0 : index
    %34 = vector.load %arg7[%c32, %c0_22] : memref<64x32xf32, #tpu.memory_space<vmem>>, vector<8x32xf32>
    tpu.vector_store %arg7[%c32, %c0_22], %33 {strides = array<i32>} : memref<64x32xf32, #tpu.memory_space<vmem>>, vector<8x32xf32>,
    %35 = vector.extract_strided_slice %2 {offsets = [40, 0], sizes = [8, 32], strides = [1, 1]} : vector<64x32xf32> to vector<8x32xf32>
    %cst_23 = arith.constant dense<0.000000e+00> : vector<8x32xf32>
    %36 = tpu.matmul %33, %3, %cst_23 {dimension_numbers = #tpu.dot_dimension_numbers<[1], [0], [0], [1], [0, 0, 1, 1], [], []>} : vector<8x32xf32>, vector<32x32xf32>, vector<8x32xf32> -> vector<8x32xf32>
    %37 = arith.addf %35, %36 : vector<8x32xf32>
    %cst_24 = arith.constant 0.000000e+00 : f32
    %38 = vector.broadcast %cst_24 : f32 to vector<8x32xf32>
    %39 = arith.maximumf %37, %38 : vector<8x32xf32>
    %c40 = arith.constant 40 : index
    %c0_25 = arith.constant 0 : index
    %40 = vector.load %arg7[%c40, %c0_25] : memref<64x32xf32, #tpu.memory_space<vmem>>, vector<8x32xf32>
    tpu.vector_store %arg7[%c40, %c0_25], %39 {strides = array<i32>} : memref<64x32xf32, #tpu.memory_space<vmem>>, vector<8x32xf32>,
    %41 = vector.extract_strided_slice %2 {offsets = [48, 0], sizes = [8, 32], strides = [1, 1]} : vector<64x32xf32> to vector<8x32xf32>
    %cst_26 = arith.constant dense<0.000000e+00> : vector<8x32xf32>
    %42 = tpu.matmul %39, %3, %cst_26 {dimension_numbers = #tpu.dot_dimension_numbers<[1], [0], [0], [1], [0, 0, 1, 1], [], []>} : vector<8x32xf32>, vector<32x32xf32>, vector<8x32xf32> -> vector<8x32xf32>
    %43 = arith.addf %41, %42 : vector<8x32xf32>
    %cst_27 = arith.constant 0.000000e+00 : f32
    %44 = vector.broadcast %cst_27 : f32 to vector<8x32xf32>
    %45 = arith.maximumf %43, %44 : vector<8x32xf32>
    %c48 = arith.constant 48 : index
    %c0_28 = arith.constant 0 : index
    %46 = vector.load %arg7[%c48, %c0_28] : memref<64x32xf32, #tpu.memory_space<vmem>>, vector<8x32xf32>
    tpu.vector_store %arg7[%c48, %c0_28], %45 {strides = array<i32>} : memref<64x32xf32, #tpu.memory_space<vmem>>, vector<8x32xf32>,
    %47 = vector.extract_strided_slice %2 {offsets = [56, 0], sizes = [8, 32], strides = [1, 1]} : vector<64x32xf32> to vector<8x32xf32>
    %cst_29 = arith.constant dense<0.000000e+00> : vector<8x32xf32>
    %48 = tpu.matmul %45, %3, %cst_29 {dimension_numbers = #tpu.dot_dimension_numbers<[1], [0], [0], [1], [0, 0, 1, 1], [], []>} : vector<8x32xf32>, vector<32x32xf32>, vector<8x32xf32> -> vector<8x32xf32>
    %49 = arith.addf %47, %48 : vector<8x32xf32>
    %cst_30 = arith.constant 0.000000e+00 : f32
    %50 = vector.broadcast %cst_30 : f32 to vector<8x32xf32>
    %51 = arith.maximumf %49, %50 : vector<8x32xf32>
    %c56 = arith.constant 56 : index
    %c0_31 = arith.constant 0 : index
    %52 = vector.load %arg7[%c56, %c0_31] : memref<64x32xf32, #tpu.memory_space<vmem>>, vector<8x32xf32>
    tpu.vector_store %arg7[%c56, %c0_31], %51 {strides = array<i32>} : memref<64x32xf32, #tpu.memory_space<vmem>>, vector<8x32xf32>,
    %c0_32 = arith.constant 0 : index
    %c0_33 = arith.constant 0 : index
    %53 = vector.load %arg7[%c0_32, %c0_33] : memref<64x32xf32, #tpu.memory_space<vmem>>, vector<64x32xf32>
    %c0_34 = arith.constant 0 : index
    %c0_35 = arith.constant 0 : index
    %54 = vector.load %arg3[%c0_34, %c0_35] : memref<32x128xf32, #tpu.memory_space<vmem>>, vector<32x128xf32>
    %cst_36 = arith.constant dense<0.000000e+00> : vector<64x128xf32>
    %55 = tpu.matmul %53, %54, %cst_36 {dimension_numbers = #tpu.dot_dimension_numbers<[1], [0], [0], [1], [0, 0, 1, 1], [], []>} : vector<64x32xf32>, vector<32x128xf32>, vector<64x128xf32> -> vector<64x128xf32>
    %c0_37 = arith.constant 0 : index
    %c0_38 = arith.constant 0 : index
    %56 = vector.load %arg4[%c0_37, %c0_38] : memref<1x128xf32, #tpu.memory_space<vmem>>, vector<1x128xf32>
    %57 = vector.broadcast %56 : vector<1x128xf32> to vector<64x128xf32>
    %58 = arith.addf %55, %57 : vector<64x128xf32>
    %c0_39 = arith.constant 0 : index
    %c0_40 = arith.constant 0 : index
    %59 = vector.load %arg6[%c0_39, %c0_40] : memref<64x128xf32, #tpu.memory_space<vmem>>, vector<64x128xf32>
    tpu.vector_store %arg6[%c0_39, %c0_40], %58 {strides = array<i32>} : memref<64x128xf32, #tpu.memory_space<vmem>>, vector<64x128xf32>,
    return
  }
}

</mosaic_0001>

<bundles_post_ra>
// kernel: tpu_custom_call.1
= control target key start
LH: loop header
LB: loop body
LE: loop exit
PB: predicated region body
PF: predicated region fallthrough
CT: control target
= control target key end

     0   :  { %vm60_vm0 = vcmask 1044480   ;;  %vm35_vm1 = vcmask 39936   ;;  %v1256_v9 = vmov 0.0|0.0   ;;  %s1516_s0 = inlined_call_operand.vmem [shape: f32[64,5], index: 0, kind: input, shape index: {}]   ;;  %s1517_s1 = inlined_call_operand.vmem [shape: f32[5,32], index: 1, kind: input, shape index: {}]   ;;  %s1518_s2 = inlined_call_operand.vmem [shape: f32[32,32], index: 2, kind: input, shape index: {}]   ;;  %s1519_s3 = inlined_call_operand.vmem [shape: f32[32,128], index: 3, kind: input, shape index: {}]   ;;  %s1520_s4 = inlined_call_operand.vmem [shape: f32[1,128], index: 4, kind: input, shape index: {}]   ;;  %s1521_s5 = inlined_call_operand.vmem [shape: f32[8,32], index: 5, kind: input, shape index: {}]   ;;  %s1522_s6 = inlined_call_operand.hbm [shape: f32[64,128], index: 6, kind: output, shape index: {0}]   ;;  %s1523_s7 = inlined_call_operand.vmem [shape: f32[64,32], index: 7, kind: output, shape index: {1}]  }
   0x1   :  { %v34_v0 = vld [vmem:[%s1517_s1] sm:$0x1f]  ;;  %v31_v2 = vld [vmem:[%s1516_s0 + $0x28] sm:$0xff]  ;;  %v32_v5 = vld [vmem:[%s1516_s0 + $0x30] sm:$0xff] }
   0x2   :  { %v30_v1 = vld [vmem:[%s1516_s0 + $0x20] sm:$0xff]  ;;  %1224 = vmatprep.subr.msk.mxu1 %vm60_vm0, %v34_v0  ;;  %v170_v4 = vld [vmem:[%s1518_s2 + $0x8] sm:$0xff]  ;;  %1046 = vmatprep.subr.msk.mxu0 %vm60_vm0, %v34_v0  ;;  %v171_v7 = vld [vmem:[%s1518_s2 + $0x10] sm:$0xff] }
   0x3   :  { %1054 = vmatprep.mubr.msk.f32.mxu1 %vm35_vm1, %v30_v1  ;;  %v169_v3 = vld [vmem:[%s1518_s2] sm:$0xff]  ;;  %1225 = vmatpush3.msk.msra.mxu1 %vm60_vm0, %v34_v0  ;;  %v172_v8 = vld [vmem:[%s1518_s2 + $0x18] sm:$0xff]  ;;  %v27_v13 = vld [vmem:[%s1516_s0 + $0x8] sm:$0xff] }
   0x4   :  { %v1323_v6 = vpack.c.bf16 %v170_v4, %v169_v3  ;;  %1055 = vmatmul.mubr.msk.f32.vlgmr.msra.gmra.mrb[0].mxu1 %vm35_vm1, %v31_v2  ;;  %1168 = vmatprep.subr.bf16.mxu1 %v1256_v9  ;;  %v26_v10 = vld [vmem:[%s1516_s0] sm:$0xff]  ;;  %v33_v11 = vld [vmem:[%s1516_s0 + $0x38] sm:$0xff]  ;;  %v1342_v12 = vpack.c.bf16 %v172_v8, %v171_v7 }
   0x5   :  { %1057 = vmatprep.mubr.msk.f32.mxu1 %vm35_vm1, %v32_v5 }
   0x6   :  { %1170 = vmatpush3.bf16.msra.mxu1 %v1323_v6 }
   0x7   :  { %13 = vsyncpa [#allocation3], 0  ;;  %1171 = vmatprep.subr.bf16.mxu1 %v1256_v9  ;;  %1047 = vmatpush3.msk.msra.mxu0 %vm60_vm0, %v34_v0  ;;  %vm1257_vm2 = vmmov 0   ;;  %v1258_v14 = vmov 0.0   ;;  %v173_v15 = vld [vmem:[%s1521_s5] sm:$0xff]  ;;  %vm174_vm3 = vcmask 261120  }
   0x8   :  { %1048 = vmatprep.mubr.msk.f32.mxu0 %vm35_vm1, %v26_v10  ;;  %1180 = vmatprep.subr.bf16.mxu0 %v1256_v9  ;;  %v28_v16 = vld [vmem:[%s1516_s0 + $0x10] sm:$0xff]  ;;  %v29_v27 = vld [vmem:[%s1516_s0 + $0x18] sm:$0xff]  ;;  %v791_v46 = vld [vmem:[%s1519_s3] sm:$0xff]  ;;  %s1259_s14 = smov [#allocation2]  }
   0x9   :  { %1058 = vmatmul.mubr.msk.f32.gmra.mrb[2].mxu1 %vm35_vm1, %v33_v11  ;;  %1049 = vmatmul.mubr.msk.f32.vlgmr.msra.gmra.mrb[0].mxu0 %vm35_vm1, %v27_v13  ;;  %v792_v47 = vld [vmem:[%s1519_s3 + $0x8] sm:$0xff]  ;;  %v793_v50 = vld [vmem:[%s1519_s3 + $0x10] sm:$0xff]  ;;  %v794_v51 = vld [vmem:[%s1519_s3 + $0x18] sm:$0xff]  ;;  %s944_s15 = sshll.u32 %s1259_s14, 4  ;;  %s945_s15 = int_to_ptr.vmem [resolvable:$true] %s944_s15 }
   0xa   :  { %1173 = vmatpush3.bf16.msra.mxu1 %v1342_v12  ;;  %1068 = vmatprep.mubr.msk.f32.mxu1 %vm1257_vm2, %v1258_v14  ;;  %v1216_v48 = vpack.c.bf16 %v792_v47, %v791_v46  ;;  %v1220_v55 = vpack.c.bf16 %v794_v51, %v793_v50  ;;  %v976_v2 = vld [vmem:[%s1520_s4] ss:$0 sm:$0xff]  ;;  %s1232_s16 = scalar_lea.vmem %s945_s15, 1024  ;;  %p1237_p1 = scmp.lt.s32.totalorder %s945_s15, %s945_s15 }
   0xb   :  { %1174 = vmatprep.subr.bf16.mxu1 %v1256_v9  ;;  %1182 = vmatpush3.bf16.msra.mxu0 %v1323_v6  ;;  %p1233_p0 = scmp.ne.s32.totalorder %s945_s15, %s1232_s16  ;;  %p1238_p2 = scmp.lt.s32.totalorder %s1232_s16, %s1232_s16 }
   0xc   :  { %1183 = vmatprep.subr.bf16.mxu0 %v1256_v9  ;;  %1051 = vmatprep.mubr.msk.f32.mxu0 %vm35_vm1, %v28_v16 }
   0xd   :  { %1069 = vmatmul.mubr.msk.f32.vlgmr.msra.gmra.mrb[4].mxu1 %vm174_vm3, %v173_v15  ;;  %1052 = vmatmul.mubr.msk.f32.gmra.mrb[2].mxu0 %vm35_vm1, %v29_v27  ;;  %p1239_p3 = por %p1238_p2, %p1237_p1 }
   0xe   :  { %1176 = vmatpush3.bf16.msra.mxu1 %v1323_v6  ;;  %1079 = vmatprep.mubr.msk.f32.mxu1 %vm1257_vm2, %v1258_v14 }
   0xf   :  { %1177 = vmatprep.subr.bf16.mxu1 %v1256_v9  ;;  %1185 = vmatpush3.bf16.msra.mxu0 %v1342_v12  ;;  %p1240_p4 = pnand %p1239_p3, %p1233_p0 }
  0x10   :  { %1192 = vmatprep.subr.bf16.mxu0 %v1256_v9  ;;  %1090 = vmatprep.mubr.msk.f32.mxu0 %vm1257_vm2, %v1258_v14 }
  0x12   :  { %1179 = vmatpush3.bf16.msra.mxu1 %v1342_v12 }
  0x13   :  { %1186 = vmatprep.subr.bf16.mxu1 %v1256_v9 }
  0xd7   :  { %v1375_v17 = vpop.f32.mrb[0].mxu1 }
  0xd8   :  { %v150_v18 = vpop.f32.mrb[1].mxu1 }
  0xdc   :  { %v1377_v19 = vpop.f32.mrb[2].mxu1  ;;  %v1050_v20 = vpop.f32.mrb[0].mxu0 }
  0xdd   :  { %v1379_v21 = vpop.f32.mrb[3].mxu1  ;;  %v130_v22 = vpop.f32.mrb[1].mxu0 }
  0xe0   :  { %v244_v23 = vpop.f32.mrb[4].mxu1  ;;  %v1053_v32 = vpop.f32.mrb[2].mxu0 }
  0xe1   :  { %v248_v24 = vadd.f32 %v244_v23, %v130_v22  ;;  %v1070_v25 = vpop.f32.mrb[5].mxu1  ;;  %v140_v33 = vpop.f32.mrb[3].mxu0 }
  0xe3   :  { %v249_v26 = vmax.f32 %v248_v24, 0.0 }
  0xe5   :  { %250 = vst.msk [vmem:[%s1523_s7] sm:$0xff] %vm174_vm3, %v249_v26  ;;  %1080 = vmatmul.mubr.msk.f32.vlgmr.msra.gmra.mrb[6].mxu1 %vm174_vm3, %v249_v26 }
  0xe6   :  { %1188 = vmatpush3.bf16.msra.mxu1 %v1323_v6  ;;  %1101 = vmatprep.mubr.msk.f32.mxu1 %vm1257_vm2, %v1258_v14 }
  0xe7   :  { %1189 = vmatprep.subr.bf16.mxu1 %v1256_v9 }
  0xea   :  { %1191 = vmatpush3.bf16.msra.mxu1 %v1342_v12 }
  0xeb   :  { %1198 = vmatprep.subr.bf16.mxu1 %v1256_v9 }
  0xec   :  { %v783_v56 = vld [vmem:[%s1523_s7] sm:$0xff] }
 0x1b8   :  { %v320_v28 = vpop.f32.mrb[6].mxu1 }
 0x1b9   :  { %v324_v29 = vadd.f32 %v1050_v20, %v320_v28  ;;  %v1081_v30 = vpop.f32.mrb[7].mxu1 }
 0x1bb   :  { %v325_v31 = vmax.f32 %v324_v29, 0.0 }
 0x1bd   :  { %326 = vst.msk [vmem:[%s1523_s7 + $0x8] sm:$0xff] %vm174_vm3, %v325_v31  ;;  %1091 = vmatmul.mubr.msk.f32.vlgmr.msra.gmra.mrb[4].mxu0 %vm174_vm3, %v325_v31 }
 0x1be   :  { %1194 = vmatpush3.bf16.msra.mxu0 %v1323_v6  ;;  %1112 = vmatprep.mubr.msk.f32.mxu0 %vm1257_vm2, %v1258_v14 }
 0x1bf   :  { %1195 = vmatprep.subr.bf16.mxu0 %v1256_v9 }
 0x1c2   :  { %1197 = vmatpush3.bf16.msra.mxu0 %v1342_v12 }
 0x1c3   :  { %1204 = vmatprep.subr.bf16.mxu0 %v1256_v9 }
 0x1c4   :  { %v784_v57 = vld [vmem:[%s1523_s7 + $0x8] sm:$0xff] }
 0x290   :  { %v396_v34 = vpop.f32.mrb[4].mxu0 }
 0x291   :  { %v400_v35 = vadd.f32 %v396_v34, %v140_v33  ;;  %v1092_v36 = vpop.f32.mrb[5].mxu0 }
 0x293   :  { %v401_v37 = vmax.f32 %v400_v35, 0.0 }
 0x295   :  { %402 = vst.msk [vmem:[%s1523_s7 + $0x10] sm:$0xff] %vm174_vm3, %v401_v37  ;;  %1102 = vmatmul.mubr.msk.f32.vlgmr.msra.gmra.mrb[8].mxu1 %vm174_vm3, %v401_v37 }
 0x296   :  { %1200 = vmatpush3.bf16.msra.mxu1 %v1323_v6  ;;  %1123 = vmatprep.mubr.msk.f32.mxu1 %vm1257_vm2, %v1258_v14 }
 0x297   :  { %1201 = vmatprep.subr.bf16.mxu1 %v1256_v9 }
 0x29a   :  { %1203 = vmatpush3.bf16.msra.mxu1 %v1342_v12 }
 0x29b   :  { %1210 = vmatprep.subr.bf16.mxu1 %v1256_v9 }
 0x29c   :  { %v785_v58 = vld [vmem:[%s1523_s7 + $0x10] sm:$0xff] }
 0x368   :  { %v472_v38 = vpop.f32.mrb[8].mxu1 }
 0x369   :  { %v476_v39 = vadd.f32 %v1053_v32, %v472_v38  ;;  %v1103_v40 = vpop.f32.mrb[9].mxu1 }
 0x36b   :  { %v477_v41 = vmax.f32 %v476_v39, 0.0 }
 0x36d   :  { %478 = vst.msk [vmem:[%s1523_s7 + $0x18] sm:$0xff] %vm174_vm3, %v477_v41  ;;  %1113 = vmatmul.mubr.msk.f32.vlgmr.msra.gmra.mrb[6].mxu0 %vm174_vm3, %v477_v41 }
 0x36e   :  { %1206 = vmatpush3.bf16.msra.mxu0 %v1323_v6  ;;  %1134 = vmatprep.mubr.msk.f32.mxu0 %vm1257_vm2, %v1258_v14 }
 0x36f   :  { %1207 = vmatprep.subr.bf16.mxu0 %v1256_v9 }
 0x372   :  { %1209 = vmatpush3.bf16.msra.mxu0 %v1342_v12 }
 0x373   :  { %1217 = vmatprep.subr.bf16.mxu0 %v1216_v48 }
 0x374   :  { %v786_v59 = vld [vmem:[%s1523_s7 + $0x18] sm:$0xff] }
 0x440   :  { %v548_v42 = vpop.f32.mrb[6].mxu0 }
 0x441   :  { %v552_v43 = vadd.f32 %v548_v42, %v150_v18  ;;  %v1114_v44 = vpop.f32.mrb[7].mxu0 }
 0x443   :  { %v553_v45 = vmax.f32 %v552_v43, 0.0 }
 0x445   :  { %554 = vst.msk [vmem:[%s1523_s7 + $0x20] sm:$0xff] %vm174_vm3, %v553_v45  ;;  %1124 = vmatmul.mubr.msk.f32.vlgmr.msra.gmra.mrb[10].mxu1 %vm174_vm3, %v553_v45 }
 0x446   :  { %1212 = vmatpush3.bf16.msra.mxu1 %v1323_v6  ;;  %1145 = vmatprep.mubr.msk.f32.mxu1 %vm1257_vm2, %v1258_v14 }
 0x447   :  { %1213 = vmatprep.subr.bf16.mxu1 %v1256_v9 }
 0x44a   :  { %1215 = vmatpush3.bf16.msra.mxu1 %v1342_v12 }
 0x44c   :  { %v787_v60 = vld [vmem:[%s1523_s7 + $0x20] sm:$0xff] }
 0x518   :  { %v624_v49 = vpop.f32.mrb[10].mxu1 }
 0x519   :  { %v628_v52 = vadd.f32 %v1375_v17, %v624_v49  ;;  %v1125_v53 = vpop.f32.mrb[11].mxu1 }
 0x51b   :  { %v629_v54 = vmax.f32 %v628_v52, 0.0 }
 0x51d   :  { %630 = vst.msk [vmem:[%s1523_s7 + $0x28] sm:$0xff] %vm174_vm3, %v629_v54  ;;  %1135 = vmatmul.mubr.msk.f32.vlgmr.msra.gmra.mrb[8].mxu0 %vm174_vm3, %v629_v54 }
 0x51e   :  { %1219 = vmatpush3.bf16.msra.mxu0 %v1216_v48  ;;  %1156 = vmatprep.mubr.msk.f32.mxu0 %vm174_vm3, %v783_v56 }
 0x51f   :  { %1221 = vmatprep.subr.bf16.mxu0 %v1220_v55 }
 0x522   :  { %1223 = vmatpush3.bf16.msra.mxu0 %v1220_v55 }
 0x524   :  { %v788_v61 = vld [vmem:[%s1523_s7 + $0x28] sm:$0xff] }
 0x525   :  { %1157 = vmatmul.mubr.msk.f32.vlgmr.msra.gmra.mrb[10].mxu0 %vm174_vm3, %v784_v57 }
 0x526   :  { %1159 = vmatprep.mubr.msk.f32.mxu0 %vm174_vm3, %v785_v58 }
 0x529   :  { %1160 = vmatmul.mubr.msk.f32.gmra.mrb[12].mxu0 %vm174_vm3, %v786_v59 }
 0x52a   :  { %1162 = vmatprep.mubr.msk.f32.mxu0 %vm174_vm3, %v787_v60 }
 0x52d   :  { %1163 = vmatmul.mubr.msk.f32.gmra.mrb[14].mxu0 %vm174_vm3, %v788_v61 }
 0x5f0   :  { %v700_v62 = vpop.f32.mrb[8].mxu0 }
 0x5f1   :  { %v704_v63 = vadd.f32 %v700_v62, %v1379_v21  ;;  %v1136_v0 = vpop.f32.mrb[9].mxu0 }
 0x5f3   :  { %v705_v1 = vmax.f32 %v704_v63, 0.0 }
 0x5f5   :  { %706 = vst.msk [vmem:[%s1523_s7 + $0x30] sm:$0xff] %vm174_vm3, %v705_v1  ;;  %1146 = vmatmul.mubr.msk.f32.vlgmr.msra.gmra.mrb[12].mxu1 %vm174_vm3, %v705_v1 }
 0x5f8   :  { %v1158_v3 = vpop.f32.mrb[10].mxu0 }
 0x5f9   :  { %v898_v4 = vadd.f32 %v1158_v3, %v976_v2  ;;  %v892_v5 = vpop.f32.mrb[11].mxu0 }
 0x5fa   :  { %v893_v6 = vadd.f32 %v976_v2, %v892_v5 }
 0x5fb   :  { %932 = vst [vmem:[#allocation2 + $0x8] sm:$0xff] %v898_v4 }
 0x5fc   :  { %931 = vst [vmem:[#allocation2] sm:$0xff] %v893_v6  ;;  %v1161_v7 = vpop.f32.mrb[12].mxu0  ;;  %v789_v8 = vld [vmem:[%s1523_s7 + $0x30] sm:$0xff] }
 0x5fd   :  { %v908_v9 = vadd.f32 %v1161_v7, %v976_v2  ;;  %v902_v10 = vpop.f32.mrb[13].mxu0  ;;  %1165 = vmatprep.mubr.msk.f32.mxu0 %vm174_vm3, %v789_v8 }
 0x5fe   :  { %v903_v11 = vadd.f32 %v976_v2, %v902_v10 }
 0x5ff   :  { %934 = vst [vmem:[#allocation2 + $0x18] sm:$0xff] %v908_v9 }
 0x600   :  { %933 = vst [vmem:[#allocation2 + $0x10] sm:$0xff] %v903_v11  ;;  %v1164_v12 = vpop.f32.mrb[14].mxu0 }
 0x601   :  { %v918_v13 = vadd.f32 %v1164_v12, %v976_v2  ;;  %v912_v14 = vpop.f32.mrb[15].mxu0 }
 0x602   :  { %v913_v15 = vadd.f32 %v976_v2, %v912_v14 }
 0x603   :  { %936 = vst [vmem:[#allocation2 + $0x28] sm:$0xff] %v918_v13 }
 0x604   :  { %935 = vst [vmem:[#allocation2 + $0x20] sm:$0xff] %v913_v15 }
 0x6c8   :  { %v776_v16 = vpop.f32.mrb[12].mxu1 }
 0x6c9   :  { %v780_v17 = vadd.f32 %v1377_v19, %v776_v16  ;;  %v1147_v18 = vpop.f32.mrb[13].mxu1 }
 0x6cb   :  { %v781_v20 = vmax.f32 %v780_v17, 0.0 }
 0x6cd   :  { %782 = vst.msk [vmem:[%s1523_s7 + $0x38] sm:$0xff] %vm174_vm3, %v781_v20 }
 0x6d4   :  { %v790_v21 = vld [vmem:[%s1523_s7 + $0x38] sm:$0xff] }
 0x6d5   :  { %1166 = vmatmul.mubr.msk.f32.gmra.mrb[16].mxu0 %vm174_vm3, %v790_v21 }
 0x7a8   :  { %v1167_v22 = vpop.f32.mrb[16].mxu0 }
 0x7a9   :  { %v928_v23 = vadd.f32 %v1167_v22, %v976_v2  ;;  %v922_v24 = vpop.f32.mrb[17].mxu0 }
 0x7aa   :  { %v923_v25 = vadd.f32 %v976_v2, %v922_v24 }
 0x7ab   :  { %938 = vst [vmem:[#allocation2 + $0x38] sm:$0xff] %v928_v23 }
 0x7ac   :  { %937 = vst [vmem:[#allocation2 + $0x30] sm:$0xff] %v923_v25 }
 0x7ad   :  { %1243 = shalt.err (!%p1240_p4)
}
 0x7ae   :  { %s1244_s18 = scalar_lea.hbm %s1522_s6, 1024 }
 0x7af   :  { %p1245_p5 = scmp.ne.s32.totalorder %s1522_s6, %s1244_s18  ;;  %p1248_p6 = scmp.lt.u32.totalorder %s1244_s18, %s1522_s6 }
 0x7b1   :  { %p1250_p7 = pnand %p1248_p6, %p1245_p5 }
 0x7b3   :  { %1253 = shalt.err (!%p1250_p7)
}
 0x7b4   :  { %s1260_s3 = smov 128   ;;  %s1261_s22 = smov 8  }
 0x7b5   :  { %950 = dma.vmem_to_hbm [thread:$0]  %s945_s15, 1024, %s1522_s6, [#allocation3], %s1260_s3, %s1260_s3, %s1261_s22  }
 0x7b6   :  { %1254 = dma.done.wait [#allocation3], 1024  }
 0x7b7   :  { %1255 = vsyncadd [#allocation3], 4294966272 }
 0x7b8   :  { %958 = vsyncpa [#allocation3], 1 }

</bundles_post_ra>
